<compile_context>
chip_gen: v5e
topology: v5e:2x2
jax: 0.10.0
libtpu: 0.0.40
codegen_flags: <defaults>
</compile_context>

<pallas_src>
import functools

import jax
import jax.numpy as jnp
from jax.experimental import pallas as pl
from jax.experimental.pallas import tpu as pltpu


def _adaptive_attention_kernel(
    P,                                   # static: number of pixels
    # batch-blocked inputs
    v_ref,                               # (Bt*P, D) flattened spatial features
    h_ref, s_ref,                        # (Bt, D)
    # weights (VMEM-resident across the batch grid)
    w_aff_s_ref, b_aff_s_ref,
    w_aff_h_ref, b_aff_h_ref,
    w_s_ref, b_s_ref,
    w_g_ref, b_g_ref,
    w_v_ref, b_v_ref,
    w_h_ref,                             # (1, A) row
    b_h_ref,                             # (1, 1) SMEM scalar
    w_p_ref, b_p_ref,
    # outputs
    out_ref,                             # (Bt, D)
    alpha_ref,                           # (Bt, P_pad) lane-dense: [alpha | beta | 0...]
):
    Bt, D = h_ref.shape
    A = w_s_ref.shape[1]
    P_pad = alpha_ref.shape[1]

    # s_t = relu(affine_s(s_t)); h_t = tanh(affine_h(h_t))
    s = jnp.maximum(
        jnp.dot(s_ref[...], w_aff_s_ref[...], preferred_element_type=jnp.float32)
        + b_aff_s_ref[...], 0.0)
    h = jnp.tanh(
        jnp.dot(h_ref[...], w_aff_h_ref[...], preferred_element_type=jnp.float32)
        + b_aff_h_ref[...])

    g = jnp.dot(h, w_g_ref[...], preferred_element_type=jnp.float32) + b_g_ref[...]    # (Bt, A)
    sen = jnp.dot(s, w_s_ref[...], preferred_element_type=jnp.float32) + b_s_ref[...]  # (Bt, A)

    # Dominant FLOP term: one big (Bt*P, D) @ (D, A) MXU matmul (full tile occupancy).
    v2d = v_ref[...]
    vis2d = (jnp.dot(v2d, w_v_ref[...], preferred_element_type=jnp.float32)
             + b_v_ref[...])                                                            # (Bt*P, A)
    vis = vis2d.reshape(Bt, P, A)

    # extended = tanh([visual_att ; sentinel_att] + hidden_att)
    ext_vis = jnp.tanh(vis + g[:, None, :])          # (Bt, P, A)
    ext_sen = jnp.tanh(sen + g)                      # (Bt, A)

    # z = w_h(extended): VPU multiply + lane (XLU) reduce instead of an N=1 MXU matvec.
    wh = w_h_ref[...]                                # (1, A)
    bh = b_h_ref[0, 0]                               # SMEM scalar
    z_vis = jnp.sum(ext_vis * wh, axis=-1) + bh                      # (Bt, P)
    z_sen = jnp.sum(ext_sen * wh, axis=-1, keepdims=True) + bh       # (Bt, 1)

    # Split softmax over [z_vis ; z_sen] — no concat/slice of a width-(P+1) tensor.
    z_max = jnp.maximum(jnp.max(z_vis, axis=-1, keepdims=True), z_sen)   # (Bt, 1)
    e_vis = jnp.exp(z_vis - z_max)                                       # (Bt, P)
    e_sen = jnp.exp(z_sen - z_max)                                       # (Bt, 1)
    inv = pl.reciprocal(jnp.sum(e_vis, axis=-1, keepdims=True) + e_sen,
                        approx=True)                                     # (Bt, 1) on EUP

    alpha_vis = e_vis * inv                                              # (Bt, P)
    beta = e_sen * inv                                                   # (Bt, 1)

    # c_hat_t = sum_p alpha_p * V_p + beta * s   (sublane reduce on the XLU slot)
    v3d = v2d.reshape(Bt, P, D)
    c_hat = (jnp.sum(v3d.astype(jnp.float32) * alpha_vis[:, :, None], axis=1)
             + beta * s)                                                 # (Bt, D)

    # adaptive_out = tanh(W_p(c_hat + h))
    out_ref[...] = jnp.tanh(
        jnp.dot(c_hat + h, w_p_ref[...], preferred_element_type=jnp.float32)
        + b_p_ref[...]).astype(out_ref.dtype)

    # Lane-dense store: [alpha_vis | beta | zeros] into the 128-multiple slab.
    pad = P_pad - (P + 1)
    parts = [alpha_vis, beta]
    if pad > 0:
        parts.append(jnp.zeros((Bt, pad), jnp.float32))
    alpha_ref[...] = jnp.concatenate(parts, axis=-1)


def adaptive_attention(V, h_t, s_t, params, *, block_b=None, param_dtype=jnp.float32):
    """Adaptive attention forward pass as one batch-gridded Pallas kernel.

    Returns (adaptive_out (B,D), alpha (B,P), beta (B,1)).
    block_b sizing guidance: v7x (64 MiB VMEM) ~16 at production shapes;
    v5e/v6e (128 MiB) 32-64. For the small test shapes any divisor of B works.
    """
    B, P, D = V.shape
    A = params['w_s'].shape[1]
    P_pad = pl.cdiv(P + 1, 128) * 128

    if block_b is None:
        block_b = 8 if B % 8 == 0 else B
    assert B % block_b == 0, "batch must be divisible by the batch tile"
    grid = (B // block_b,)

    # Optionally narrow the streamed/matmul operands (accumulation stays f32).
    V2d = V.reshape(B * P, D).astype(param_dtype)
    cast_w = lambda w: w.astype(param_dtype)
    w_h_row = params['w_h'].reshape(1, A)

    args = (
        V2d, h_t, s_t,
        cast_w(params['affine_s']), params['affine_s_b'],
        cast_w(params['affine_h']), params['affine_h_b'],
        cast_w(params['w_s']), params['w_s_b'],
        cast_w(params['w_g']), params['w_g_b'],
        cast_w(params['w_v']), params['w_v_b'],
        w_h_row, params['w_h_b'],
        cast_w(params['W_p']), params['W_p_b'],
    )

    batch_map = lambda i: (i, 0)
    const_map = lambda i: (0, 0)      # weights: same block every step -> stay resident
    full = lambda shape: pl.BlockSpec(shape, const_map)

    in_specs = [
        pl.BlockSpec((block_b * P, D), batch_map),           # V (flattened)
        pl.BlockSpec((block_b, D), batch_map),               # h_t
        pl.BlockSpec((block_b, D), batch_map),               # s_t
        full((D, D)), full((1, D)),                          # affine_s
        full((D, D)), full((1, D)),                          # affine_h
        full((D, A)), full((1, A)),                          # w_s
        full((D, A)), full((1, A)),                          # w_g
        full((D, A)), full((1, A)),                          # w_v
        full((1, A)),                                        # w_h row
        pl.BlockSpec(memory_space=pltpu.MemorySpace.SMEM),   # w_h bias (scalar path)
        full((D, D)), full((1, D)),                          # W_p
    ]
    out_specs = (
        pl.BlockSpec((block_b, D), batch_map),
        pl.BlockSpec((block_b, P_pad), batch_map),
    )
    out_shape = (
        jax.ShapeDtypeStruct((B, D), jnp.float32),       # adaptive_out
        jax.ShapeDtypeStruct((B, P_pad), jnp.float32),   # [alpha | beta | pad]
    )

    # Cost estimate so XLA schedules this well inside a decode loop.
    flops = (2 * B * P * D * A            # w_v
             + 3 * 2 * B * D * D          # affine_s, affine_h, W_p
             + 2 * 2 * B * D * A          # w_g, w_s
             + 2 * B * (P + 1) * A        # z contraction
             + 2 * B * P * D)             # weighted sum for c_hat
    transcendentals = 2 * B * D + B * (P + 1) * A + B * (P + 1)
    isz = jnp.dtype(param_dtype).itemsize
    weight_bytes = (3 * D * D + 3 * D * A + A) * isz + (3 * D + 3 * A + 1) * 4
    bytes_accessed = ((B * P * D + 2 * B * D) * isz + weight_bytes
                      + (B * D + B * P_pad) * 4)

    # VMEM budget: double-buffered batch blocks + resident weights + intermediates,
    # clamped with headroom under every generation's physical VMEM.
    block_bytes = ((block_b * P * D + 2 * block_b * D) * isz
                   + (block_b * D + block_b * P_pad) * 4)
    interm_bytes = 4 * block_b * P * A * 4
    vmem_limit = int(min(max(2 * 2 * block_bytes + weight_bytes + interm_bytes,
                             16 * 1024 * 1024),
                         48 * 1024 * 1024))

    out, alpha_pad = pl.pallas_call(
        functools.partial(_adaptive_attention_kernel, P),
        grid=grid,
        in_specs=in_specs,
        out_specs=out_specs,
        out_shape=out_shape,
        compiler_params=pltpu.CompilerParams(
            dimension_semantics=("parallel",),
            vmem_limit_bytes=vmem_limit),
        cost_estimate=pl.CostEstimate(
            flops=int(flops),
            transcendentals=int(transcendentals),
            bytes_accessed=int(bytes_accessed)),
    )(*args)

    return out, alpha_pad[:, :P], alpha_pad[:, P:P + 1]


def _linear_params(key, in_dim, out_dim):
    """PyTorch-Linear-style deterministic init; weight stored pre-transposed as (in, out)."""
    kw, kb = jax.random.split(key)
    bound = 1.0 / jnp.sqrt(jnp.float32(in_dim))
    w = jax.random.uniform(kw, (in_dim, out_dim), jnp.float32, -bound, bound)
    b = jax.random.uniform(kb, (1, out_dim), jnp.float32, -bound, bound)
    return w, b


def make_params(key, attention_dim, decoder_dim):
    keys = jax.random.split(key, 7)
    p = {}
    p['affine_s'], p['affine_s_b'] = _linear_params(keys[0], decoder_dim, decoder_dim)
    p['affine_h'], p['affine_h_b'] = _linear_params(keys[1], decoder_dim, decoder_dim)
    p['w_s'], p['w_s_b'] = _linear_params(keys[2], decoder_dim, attention_dim)
    p['w_g'], p['w_g_b'] = _linear_params(keys[3], decoder_dim, attention_dim)
    p['w_v'], p['w_v_b'] = _linear_params(keys[4], decoder_dim, attention_dim)
    p['w_h'], p['w_h_b'] = _linear_params(keys[5], attention_dim, 1)
    p['W_p'], p['W_p_b'] = _linear_params(keys[6], decoder_dim, decoder_dim)
    return p


def reference_forward(V, h_t, s_t, p):
    """Pure-JAX reference mirroring the PyTorch module, for verification."""
    s = jnp.maximum(s_t @ p['affine_s'] + p['affine_s_b'], 0.0)
    h = jnp.tanh(h_t @ p['affine_h'] + p['affine_h_b'])
    hidden_att = (h @ p['w_g'] + p['w_g_b'])[:, None, :]
    visual_att = jnp.einsum('bpd,da->bpa', V, p['w_v']) + p['w_v_b'][None]
    sentinel_att = (s @ p['w_s'] + p['w_s_b'])[:, None, :]
    extended = jnp.concatenate([visual_att, sentinel_att], axis=1)
    extended = jnp.tanh(extended + hidden_att)
    z = jnp.einsum('bka,ao->bko', extended, p['w_h'])[..., 0] + p['w_h_b'][0, 0]
    alpha = jax.nn.softmax(z, axis=1)
    concat_feature = jnp.concatenate([V, s[:, None, :]], axis=1)
    c_hat = jnp.sum(concat_feature * alpha[:, :, None], axis=1)
    adaptive_out = jnp.tanh((c_hat + h) @ p['W_p'] + p['W_p_b'])
    return adaptive_out, alpha[:, :-1], alpha[:, -1:]


if __name__ == "__main__":
    B, P = 16, 8            # batch, num_pixels (small test shapes)
    decoder_dim = 32
    attention_dim = 32

    key = jax.random.PRNGKey(0)
    k_v, k_h, k_s, k_p = jax.random.split(key, 4)
    V = jax.random.normal(k_v, (B, P, decoder_dim), jnp.float32)
    h_t = jax.random.normal(k_h, (B, decoder_dim), jnp.float32)
    s_t = jax.random.normal(k_s, (B, decoder_dim), jnp.float32)
    params = make_params(k_p, attention_dim, decoder_dim)

    out, alpha, beta = jax.block_until_ready(
        adaptive_attention(V, h_t, s_t, params, block_b=8))

    # correctness check vs pure-JAX reference (tolerance loosened for the
    # approximate EUP reciprocal used in the softmax normalization)
    ref_out, ref_alpha, ref_beta = reference_forward(V, h_t, s_t, params)
    assert out.shape == (B, decoder_dim)
    assert alpha.shape == (B, P)
    assert beta.shape == (B, 1)
    assert jnp.allclose(out, ref_out, atol=2e-2, rtol=2e-2)
    assert jnp.allclose(alpha, ref_alpha, atol=2e-2, rtol=2e-2)
    assert jnp.allclose(beta, ref_beta, atol=2e-2, rtol=2e-2)

    print("KERNEL_OK")
</pallas_src>

<mosaic_0001>
module attributes {stable_mosaic.version = 11 : i64} {
  func.func @_adaptive_attention_kernel(%arg0: i32, %arg1: memref<64x32xf32, #tpu.memory_space<vmem>>, %arg2: memref<8x32xf32, #tpu.memory_space<vmem>>, %arg3: memref<8x32xf32, #tpu.memory_space<vmem>>, %arg4: memref<32x32xf32, #tpu.memory_space<vmem>>, %arg5: memref<1x32xf32, #tpu.memory_space<vmem>>, %arg6: memref<32x32xf32, #tpu.memory_space<vmem>>, %arg7: memref<1x32xf32, #tpu.memory_space<vmem>>, %arg8: memref<32x32xf32, #tpu.memory_space<vmem>>, %arg9: memref<1x32xf32, #tpu.memory_space<vmem>>, %arg10: memref<32x32xf32, #tpu.memory_space<vmem>>, %arg11: memref<1x32xf32, #tpu.memory_space<vmem>>, %arg12: memref<32x32xf32, #tpu.memory_space<vmem>>, %arg13: memref<1x32xf32, #tpu.memory_space<vmem>>, %arg14: memref<1x32xf32, #tpu.memory_space<vmem>>, %arg15: memref<1x1xf32, #tpu.memory_space<smem>>, %arg16: memref<32x32xf32, #tpu.memory_space<vmem>>, %arg17: memref<1x32xf32, #tpu.memory_space<vmem>>, %arg18: memref<8x32xf32, #tpu.memory_space<vmem>>, %arg19: memref<8x128xf32, #tpu.memory_space<vmem>>) attributes {dimension_semantics = [#tpu.dimension_semantics<parallel>], iteration_bounds = array<i64: 2>, scalar_prefetch = 0 : i64, scratch_operands = 0 : i64, tpu.core_type = #tpu.core_type<tc>, window_params = [{transform_indices = @transform_0, window_bounds = array<i64: 64, 32>}, {transform_indices = @transform_1, window_bounds = array<i64: 8, 32>}, {transform_indices = @transform_2, window_bounds = array<i64: 8, 32>}, {pipeline_mode = #tpu.pipeline_mode<synchronous>, transform_indices = @transform_3, window_bounds = array<i64: 32, 32>}, {pipeline_mode = #tpu.pipeline_mode<synchronous>, transform_indices = @transform_4, window_bounds = array<i64: 1, 32>}, {pipeline_mode = #tpu.pipeline_mode<synchronous>, transform_indices = @transform_5, window_bounds = array<i64: 32, 32>}, {pipeline_mode = #tpu.pipeline_mode<synchronous>, transform_indices = @transform_6, window_bounds = array<i64: 1, 32>}, {pipeline_mode = #tpu.pipeline_mode<synchronous>, transform_indices = @transform_7, window_bounds = array<i64: 32, 32>}, {pipeline_mode = #tpu.pipeline_mode<synchronous>, transform_indices = @transform_8, window_bounds = array<i64: 1, 32>}, {pipeline_mode = #tpu.pipeline_mode<synchronous>, transform_indices = @transform_9, window_bounds = array<i64: 32, 32>}, {pipeline_mode = #tpu.pipeline_mode<synchronous>, transform_indices = @transform_10, window_bounds = array<i64: 1, 32>}, {pipeline_mode = #tpu.pipeline_mode<synchronous>, transform_indices = @transform_11, window_bounds = array<i64: 32, 32>}, {pipeline_mode = #tpu.pipeline_mode<synchronous>, transform_indices = @transform_12, window_bounds = array<i64: 1, 32>}, {pipeline_mode = #tpu.pipeline_mode<synchronous>, transform_indices = @transform_13, window_bounds = array<i64: 1, 32>}, {transform_indices = @transform_14, window_bounds = array<i64: 1, 1>}, {pipeline_mode = #tpu.pipeline_mode<synchronous>, transform_indices = @transform_15, window_bounds = array<i64: 32, 32>}, {pipeline_mode = #tpu.pipeline_mode<synchronous>, transform_indices = @transform_16, window_bounds = array<i64: 1, 32>}, {transform_indices = @transform_17, window_bounds = array<i64: 8, 32>}, {transform_indices = @transform_18, window_bounds = array<i64: 8, 128>}]} {
    %c0 = arith.constant 0 : index
    %c0_0 = arith.constant 0 : index
    %0 = vector.load %arg3[%c0, %c0_0] : memref<8x32xf32, #tpu.memory_space<vmem>>, vector<8x32xf32>
    %c0_1 = arith.constant 0 : index
    %c0_2 = arith.constant 0 : index
    %1 = vector.load %arg4[%c0_1, %c0_2] : memref<32x32xf32, #tpu.memory_space<vmem>>, vector<32x32xf32>
    %cst = arith.constant dense<0.000000e+00> : vector<8x32xf32>
    %2 = tpu.matmul %0, %1, %cst {dimension_numbers = #tpu.dot_dimension_numbers<[1], [0], [0], [1], [0, 0, 1, 1], [], []>} : vector<8x32xf32>, vector<32x32xf32>, vector<8x32xf32> -> vector<8x32xf32>
    %c0_3 = arith.constant 0 : index
    %c0_4 = arith.constant 0 : index
    %3 = vector.load %arg5[%c0_3, %c0_4] : memref<1x32xf32, #tpu.memory_space<vmem>>, vector<1x32xf32>
    %4 = vector.broadcast %3 : vector<1x32xf32> to vector<8x32xf32>
    %5 = arith.addf %2, %4 : vector<8x32xf32>
    %cst_5 = arith.constant 0.000000e+00 : f32
    %6 = vector.broadcast %cst_5 : f32 to vector<8x32xf32>
    %7 = arith.maximumf %5, %6 : vector<8x32xf32>
    %c0_6 = arith.constant 0 : index
    %c0_7 = arith.constant 0 : index
    %8 = vector.load %arg2[%c0_6, %c0_7] : memref<8x32xf32, #tpu.memory_space<vmem>>, vector<8x32xf32>
    %c0_8 = arith.constant 0 : index
    %c0_9 = arith.constant 0 : index
    %9 = vector.load %arg6[%c0_8, %c0_9] : memref<32x32xf32, #tpu.memory_space<vmem>>, vector<32x32xf32>
    %cst_10 = arith.constant dense<0.000000e+00> : vector<8x32xf32>
    %10 = tpu.matmul %8, %9, %cst_10 {dimension_numbers = #tpu.dot_dimension_numbers<[1], [0], [0], [1], [0, 0, 1, 1], [], []>} : vector<8x32xf32>, vector<32x32xf32>, vector<8x32xf32> -> vector<8x32xf32>
    %c0_11 = arith.constant 0 : index
    %c0_12 = arith.constant 0 : index
    %11 = vector.load %arg7[%c0_11, %c0_12] : memref<1x32xf32, #tpu.memory_space<vmem>>, vector<1x32xf32>
    %12 = vector.broadcast %11 : vector<1x32xf32> to vector<8x32xf32>
    %13 = arith.addf %10, %12 : vector<8x32xf32>
    %14 = math.tanh %13 : vector<8x32xf32>
    %c0_13 = arith.constant 0 : index
    %c0_14 = arith.constant 0 : index
    %15 = vector.load %arg10[%c0_13, %c0_14] : memref<32x32xf32, #tpu.memory_space<vmem>>, vector<32x32xf32>
    %cst_15 = arith.constant dense<0.000000e+00> : vector<8x32xf32>
    %16 = tpu.matmul %14, %15, %cst_15 {dimension_numbers = #tpu.dot_dimension_numbers<[1], [0], [0], [1], [0, 0, 1, 1], [], []>} : vector<8x32xf32>, vector<32x32xf32>, vector<8x32xf32> -> vector<8x32xf32>
    %c0_16 = arith.constant 0 : index
    %c0_17 = arith.constant 0 : index
    %17 = vector.load %arg11[%c0_16, %c0_17] : memref<1x32xf32, #tpu.memory_space<vmem>>, vector<1x32xf32>
    %18 = vector.broadcast %17 : vector<1x32xf32> to vector<8x32xf32>
    %19 = arith.addf %16, %18 : vector<8x32xf32>
    %c0_18 = arith.constant 0 : index
    %c0_19 = arith.constant 0 : index
    %20 = vector.load %arg8[%c0_18, %c0_19] : memref<32x32xf32, #tpu.memory_space<vmem>>, vector<32x32xf32>
    %cst_20 = arith.constant dense<0.000000e+00> : vector<8x32xf32>
    %21 = tpu.matmul %7, %20, %cst_20 {dimension_numbers = #tpu.dot_dimension_numbers<[1], [0], [0], [1], [0, 0, 1, 1], [], []>} : vector<8x32xf32>, vector<32x32xf32>, vector<8x32xf32> -> vector<8x32xf32>
    %c0_21 = arith.constant 0 : index
    %c0_22 = arith.constant 0 : index
    %22 = vector.load %arg9[%c0_21, %c0_22] : memref<1x32xf32, #tpu.memory_space<vmem>>, vector<1x32xf32>
    %23 = vector.broadcast %22 : vector<1x32xf32> to vector<8x32xf32>
    %24 = arith.addf %21, %23 : vector<8x32xf32>
    %c0_23 = arith.constant 0 : index
    %c0_24 = arith.constant 0 : index
    %25 = vector.load %arg1[%c0_23, %c0_24] : memref<64x32xf32, #tpu.memory_space<vmem>>, vector<64x32xf32>
    %c0_25 = arith.constant 0 : index
    %c0_26 = arith.constant 0 : index
    %26 = vector.load %arg12[%c0_25, %c0_26] : memref<32x32xf32, #tpu.memory_space<vmem>>, vector<32x32xf32>
    %cst_27 = arith.constant dense<0.000000e+00> : vector<64x32xf32>
    %27 = tpu.matmul %25, %26, %cst_27 {dimension_numbers = #tpu.dot_dimension_numbers<[1], [0], [0], [1], [0, 0, 1, 1], [], []>} : vector<64x32xf32>, vector<32x32xf32>, vector<64x32xf32> -> vector<64x32xf32>
    %c0_28 = arith.constant 0 : index
    %c0_29 = arith.constant 0 : index
    %28 = vector.load %arg13[%c0_28, %c0_29] : memref<1x32xf32, #tpu.memory_space<vmem>>, vector<1x32xf32>
    %29 = vector.broadcast %28 : vector<1x32xf32> to vector<64x32xf32>
    %30 = arith.addf %27, %29 : vector<64x32xf32>
    %31 = vector.shape_cast %30 : vector<64x32xf32> to vector<8x8x32xf32>
    %32 = vector.shape_cast %19 : vector<8x32xf32> to vector<8x1x32xf32>
    %33 = vector.broadcast %32 : vector<8x1x32xf32> to vector<8x8x32xf32>
    %34 = arith.addf %31, %33 : vector<8x8x32xf32>
    %35 = math.tanh %34 : vector<8x8x32xf32>
    %36 = arith.addf %24, %19 : vector<8x32xf32>
    %37 = math.tanh %36 : vector<8x32xf32>
    %c0_30 = arith.constant 0 : index
    %c0_31 = arith.constant 0 : index
    %38 = vector.load %arg14[%c0_30, %c0_31] : memref<1x32xf32, #tpu.memory_space<vmem>>, vector<1x32xf32>
    %c0_32 = arith.constant 0 : index
    %c0_33 = arith.constant 0 : index
    %39 = memref.load %arg15[%c0_32, %c0_33] : memref<1x1xf32, #tpu.memory_space<smem>>
    %40 = vector.shape_cast %38 : vector<1x32xf32> to vector<1x1x32xf32>
    %41 = vector.broadcast %40 : vector<1x1x32xf32> to vector<8x8x32xf32>
    %42 = arith.mulf %35, %41 : vector<8x8x32xf32>
    %cst_34 = arith.constant dense<0.000000e+00> : vector<8x8xf32>
    %43 = vector.multi_reduction <add>, %42, %cst_34 [2] : vector<8x8x32xf32> to vector<8x8xf32>
    %44 = vector.broadcast %39 : f32 to vector<8x8xf32>
    %45 = arith.addf %43, %44 : vector<8x8xf32>
    %46 = vector.broadcast %38 : vector<1x32xf32> to vector<8x32xf32>
    %47 = arith.mulf %37, %46 : vector<8x32xf32>
    %cst_35 = arith.constant dense<0.000000e+00> : vector<8xf32>
    %48 = vector.multi_reduction <add>, %47, %cst_35 [1] : vector<8x32xf32> to vector<8xf32>
    %49 = vector.shape_cast %48 : vector<8xf32> to vector<8x1xf32>
    %50 = vector.broadcast %39 : f32 to vector<8x1xf32>
    %51 = arith.addf %49, %50 : vector<8x1xf32>
    %cst_36 = arith.constant dense<0xFF800000> : vector<8xf32>
    %52 = vector.multi_reduction <maximumf>, %45, %cst_36 [1] : vector<8x8xf32> to vector<8xf32>
    %53 = vector.shape_cast %52 : vector<8xf32> to vector<8x1xf32>
    %54 = arith.maximumf %53, %51 : vector<8x1xf32>
    %55 = vector.broadcast %54 : vector<8x1xf32> to vector<8x8xf32>
    %56 = arith.subf %45, %55 : vector<8x8xf32>
    %57 = math.exp %56 : vector<8x8xf32>
    %58 = arith.subf %51, %54 : vector<8x1xf32>
    %59 = math.exp %58 : vector<8x1xf32>
    %cst_37 = arith.constant dense<0.000000e+00> : vector<8xf32>
    %60 = vector.multi_reduction <add>, %57, %cst_37 [1] : vector<8x8xf32> to vector<8xf32>
    %61 = vector.shape_cast %60 : vector<8xf32> to vector<8x1xf32>
    %62 = arith.addf %61, %59 : vector<8x1xf32>
    %63 = tpu.reciprocal %62 {approx = true} : vector<8x1xf32> -> vector<8x1xf32>
    %64 = vector.broadcast %63 : vector<8x1xf32> to vector<8x8xf32>
    %65 = arith.mulf %57, %64 : vector<8x8xf32>
    %66 = arith.mulf %59, %63 : vector<8x1xf32>
    %67 = vector.shape_cast %25 : vector<64x32xf32> to vector<8x8x32xf32>
    %68 = vector.shape_cast %65 : vector<8x8xf32> to vector<8x8x1xf32>
    %69 = vector.broadcast %68 : vector<8x8x1xf32> to vector<8x8x32xf32>
    %70 = arith.mulf %67, %69 : vector<8x8x32xf32>
    %cst_38 = arith.constant dense<0.000000e+00> : vector<8x32xf32>
    %71 = vector.multi_reduction <add>, %70, %cst_38 [1] : vector<8x8x32xf32> to vector<8x32xf32>
    %72 = vector.broadcast %66 : vector<8x1xf32> to vector<8x32xf32>
    %73 = arith.mulf %72, %7 : vector<8x32xf32>
    %74 = arith.addf %71, %73 : vector<8x32xf32>
    %75 = arith.addf %74, %14 : vector<8x32xf32>
    %c0_39 = arith.constant 0 : index
    %c0_40 = arith.constant 0 : index
    %76 = vector.load %arg16[%c0_39, %c0_40] : memref<32x32xf32, #tpu.memory_space<vmem>>, vector<32x32xf32>
    %cst_41 = arith.constant dense<0.000000e+00> : vector<8x32xf32>
    %77 = tpu.matmul %75, %76, %cst_41 {dimension_numbers = #tpu.dot_dimension_numbers<[1], [0], [0], [1], [0, 0, 1, 1], [], []>} : vector<8x32xf32>, vector<32x32xf32>, vector<8x32xf32> -> vector<8x32xf32>
    %c0_42 = arith.constant 0 : index
    %c0_43 = arith.constant 0 : index
    %78 = vector.load %arg17[%c0_42, %c0_43] : memref<1x32xf32, #tpu.memory_space<vmem>>, vector<1x32xf32>
    %79 = vector.broadcast %78 : vector<1x32xf32> to vector<8x32xf32>
    %80 = arith.addf %77, %79 : vector<8x32xf32>
    %81 = math.tanh %80 : vector<8x32xf32>
    %c0_44 = arith.constant 0 : index
    %c0_45 = arith.constant 0 : index
    %82 = vector.load %arg18[%c0_44, %c0_45] : memref<8x32xf32, #tpu.memory_space<vmem>>, vector<8x32xf32>
    tpu.vector_store %arg18[%c0_44, %c0_45], %81 {strides = array<i32>} : memref<8x32xf32, #tpu.memory_space<vmem>>, vector<8x32xf32>,
    %cst_46 = arith.constant 0.000000e+00 : f32
    %83 = vector.broadcast %cst_46 : f32 to vector<8x119xf32>
    %84 = tpu.concatenate %65, %66, %83 in 1 : vector<8x8xf32>, vector<8x1xf32>, vector<8x119xf32> -> vector<8x128xf32>
    %c0_47 = arith.constant 0 : index
    %c0_48 = arith.constant 0 : index
    %85 = vector.load %arg19[%c0_47, %c0_48] : memref<8x128xf32, #tpu.memory_space<vmem>>, vector<8x128xf32>
    tpu.vector_store %arg19[%c0_47, %c0_48], %84 {strides = array<i32>} : memref<8x128xf32, #tpu.memory_space<vmem>>, vector<8x128xf32>,
    return
  }
  func.func @transform_0(%arg0: i32) -> (i32, i32) {
    %c0_i32 = arith.constant 0 : i32
    %c0_i32_0 = arith.constant 0 : i32
    return %arg0, %c0_i32 : i32, i32
  }
  func.func @transform_1(%arg0: i32) -> (i32, i32) {
    %c0_i32 = arith.constant 0 : i32
    %c0_i32_0 = arith.constant 0 : i32
    return %arg0, %c0_i32 : i32, i32
  }
  func.func @transform_2(%arg0: i32) -> (i32, i32) {
    %c0_i32 = arith.constant 0 : i32
    %c0_i32_0 = arith.constant 0 : i32
    return %arg0, %c0_i32 : i32, i32
  }
  func.func @transform_3(%arg0: i32) -> (i32, i32) {
    %c0_i32 = arith.constant 0 : i32
    %c0_i32_0 = arith.constant 0 : i32
    %c0_i32_1 = arith.constant 0 : i32
    return %c0_i32, %c0_i32_0 : i32, i32
  }
  func.func @transform_4(%arg0: i32) -> (i32, i32) {
    %c0_i32 = arith.constant 0 : i32
    %c0_i32_0 = arith.constant 0 : i32
    %c0_i32_1 = arith.constant 0 : i32
    return %c0_i32, %c0_i32_0 : i32, i32
  }
  func.func @transform_5(%arg0: i32) -> (i32, i32) {
    %c0_i32 = arith.constant 0 : i32
    %c0_i32_0 = arith.constant 0 : i32
    %c0_i32_1 = arith.constant 0 : i32
    return %c0_i32, %c0_i32_0 : i32, i32
  }
  func.func @transform_6(%arg0: i32) -> (i32, i32) {
    %c0_i32 = arith.constant 0 : i32
    %c0_i32_0 = arith.constant 0 : i32
    %c0_i32_1 = arith.constant 0 : i32
    return %c0_i32, %c0_i32_0 : i32, i32
  }
  func.func @transform_7(%arg0: i32) -> (i32, i32) {
    %c0_i32 = arith.constant 0 : i32
    %c0_i32_0 = arith.constant 0 : i32
    %c0_i32_1 = arith.constant 0 : i32
    return %c0_i32, %c0_i32_0 : i32, i32
  }
  func.func @transform_8(%arg0: i32) -> (i32, i32) {
    %c0_i32 = arith.constant 0 : i32
    %c0_i32_0 = arith.constant 0 : i32
    %c0_i32_1 = arith.constant 0 : i32
    return %c0_i32, %c0_i32_0 : i32, i32
  }
  func.func @transform_9(%arg0: i32) -> (i32, i32) {
    %c0_i32 = arith.constant 0 : i32
    %c0_i32_0 = arith.constant 0 : i32
    %c0_i32_1 = arith.constant 0 : i32
    return %c0_i32, %c0_i32_0 : i32, i32
  }
  func.func @transform_10(%arg0: i32) -> (i32, i32) {
    %c0_i32 = arith.constant 0 : i32
    %c0_i32_0 = arith.constant 0 : i32
    %c0_i32_1 = arith.constant 0 : i32
    return %c0_i32, %c0_i32_0 : i32, i32
  }
  func.func @transform_11(%arg0: i32) -> (i32, i32) {
    %c0_i32 = arith.constant 0 : i32
    %c0_i32_0 = arith.constant 0 : i32
    %c0_i32_1 = arith.constant 0 : i32
    return %c0_i32, %c0_i32_0 : i32, i32
  }
  func.func @transform_12(%arg0: i32) -> (i32, i32) {
    %c0_i32 = arith.constant 0 : i32
    %c0_i32_0 = arith.constant 0 : i32
    %c0_i32_1 = arith.constant 0 : i32
    return %c0_i32, %c0_i32_0 : i32, i32
  }
  func.func @transform_13(%arg0: i32) -> (i32, i32) {
    %c0_i32 = arith.constant 0 : i32
    %c0_i32_0 = arith.constant 0 : i32
    %c0_i32_1 = arith.constant 0 : i32
    return %c0_i32, %c0_i32_0 : i32, i32
  }
  func.func @transform_14(%arg0: i32) -> (i32, i32) {
    %c0_i32 = arith.constant 0 : i32
    %c0_i32_0 = arith.constant 0 : i32
    %c0_i32_1 = arith.constant 0 : i32
    return %c0_i32, %c0_i32_0 : i32, i32
  }
  func.func @transform_15(%arg0: i32) -> (i32, i32) {
    %c0_i32 = arith.constant 0 : i32
    %c0_i32_0 = arith.constant 0 : i32
    %c0_i32_1 = arith.constant 0 : i32
    return %c0_i32, %c0_i32_0 : i32, i32
  }
  func.func @transform_16(%arg0: i32) -> (i32, i32) {
    %c0_i32 = arith.constant 0 : i32
    %c0_i32_0 = arith.constant 0 : i32
    %c0_i32_1 = arith.constant 0 : i32
    return %c0_i32, %c0_i32_0 : i32, i32
  }
  func.func @transform_17(%arg0: i32) -> (i32, i32) {
    %c0_i32 = arith.constant 0 : i32
    %c0_i32_0 = arith.constant 0 : i32
    return %arg0, %c0_i32 : i32, i32
  }
  func.func @transform_18(%arg0: i32) -> (i32, i32) {
    %c0_i32 = arith.constant 0 : i32
    %c0_i32_0 = arith.constant 0 : i32
    return %arg0, %c0_i32 : i32, i32
  }
}

</mosaic_0001>

<bundles_post_ra>
// kernel: tpu_custom_call.1
= control target key start
LH: loop header
LB: loop body
LE: loop exit
PB: predicated region body
PF: predicated region fallthrough
CT: control target
= control target key end

     0   :  { %s2517_s0 = inlined_call_operand.vmem [shape: f32[128,32], index: 0, kind: input, shape index: {}]   ;;  %s2518_s1 = inlined_call_operand.hbm [shape: f32[16,32], index: 1, kind: input, shape index: {}]   ;;  %s2519_s2 = inlined_call_operand.hbm [shape: f32[16,32], index: 2, kind: input, shape index: {}]   ;;  %s2520_s3 = inlined_call_operand.vmem [shape: f32[32,32], index: 3, kind: input, shape index: {}]   ;;  %s2521_s4 = inlined_call_operand.vmem [shape: f32[1,32], index: 4, kind: input, shape index: {}]   ;;  %s2522_s5 = inlined_call_operand.vmem [shape: f32[32,32], index: 5, kind: input, shape index: {}]   ;;  %s2523_s6 = inlined_call_operand.vmem [shape: f32[1,32], index: 6, kind: input, shape index: {}]   ;;  %s2524_s7 = inlined_call_operand.vmem [shape: f32[32,32], index: 7, kind: input, shape index: {}]   ;;  %s2525_s8 = inlined_call_operand.vmem [shape: f32[1,32], index: 8, kind: input, shape index: {}]   ;;  %s2526_s9 = inlined_call_operand.vmem [shape: f32[32,32], index: 9, kind: input, shape index: {}]   ;;  %s2527_s10 = inlined_call_operand.vmem [shape: f32[1,32], index: 10, kind: input, shape index: {}]   ;;  %s2528_s11 = inlined_call_operand.vmem [shape: f32[32,32], index: 11, kind: input, shape index: {}]   ;;  %s2529_s12 = inlined_call_operand.vmem [shape: f32[1,32], index: 12, kind: input, shape index: {}]   ;;  %s2530_s13 = inlined_call_operand.vmem [shape: f32[1,32], index: 13, kind: input, shape index: {}]   ;;  %s2531_s14 = inlined_call_operand.<no memory space> [shape: f32[1,1], index: 14, kind: input, shape index: {}]   ;;  %s2532_s15 = inlined_call_operand.hbm [shape: f32[32,32], index: 15, kind: input, shape index: {}]   ;;  %s2533_s16 = inlined_call_operand.vmem [shape: f32[1,32], index: 16, kind: input, shape index: {}]   ;;  %s2534_s17 = inlined_call_operand.hbm [shape: f32[16,32], index: 17, kind: output, shape index: {0}]   ;;  %s2535_s18 = inlined_call_operand.hbm [shape: f32[16,128], index: 18, kind: output, shape index: {1}]  }
   0x1   :  { %2548 = sst [smem:[#allocation24_spill]] %s2517_s0 }
   0x2   :  { %2549 = sst [smem:[#allocation25_spill]] %s2518_s1 }
   0x3   :  { %2550 = sst [smem:[#allocation26_spill]] %s2519_s2 }
   0x4   :  { %2551 = sst [smem:[#allocation27_spill]] %s2525_s8 }
   0x5   :  { %2552 = sst [smem:[#allocation28_spill]] %s2527_s10 }
   0x6   :  { %2553 = sst [smem:[#allocation29_spill]] %s2529_s12 }
   0x7   :  { %2554 = sst [smem:[#allocation30_spill]] %s2530_s13 }
   0x8   :  { %2555 = sst [smem:[#allocation31_spill]] %s2532_s15 }
   0x9   :  { %2556 = sst [smem:[#allocation32_spill]] %s2533_s16 }
   0xa   :  { %2557 = sst [smem:[#allocation33_spill]] %s2534_s17 }
   0xb   :  { %2558 = sst [smem:[#allocation34_spill]] %s2535_s18 }
   0xc   :  { %24 = sst [smem:[#allocation2]] %s2531_s14 }
   0xd   :  { %25 = vsyncpa [#allocation4], 0 }
   0xe   :  { %27 = vsyncpa [#allocation4 + $0x1], 0 }
   0xf   :  { %28 = vsyncpa [#allocation7], 0 }
  0x10   :  { %30 = vsyncpa [#allocation7 + $0x1], 0 }
  0x11   :  { %31 = vsyncpa [#allocation5], 0 }
  0x12   :  { %33 = vsyncpa [#allocation5 + $0x1], 0 }
  0x13   :  { %34 = vsyncpa [#allocation11], 0 }
  0x14   :  { %36 = vsyncpa [#allocation11 + $0x1], 0  ;;  %s2019_s29 = smov 0   ;;  %s2021_s30 = smov 0  }
  0x15   :  { %s2023_s0 = smov 0   ;;  %s2025_s19 = smov 0  }
  0x16 LB: > { %2559 = sst [smem:[#allocation17_spill]] %s1903_s29  ;;  %s2043_s21 = sadd.s32 4294967295, %s1915_s19   ;;  %s1915_s19 = sphi %s2025_s19, %s2588_s19   ;;  %s1911_s0 = sphi %s2023_s0, %s2590_s0   ;;  %s1907_s30 = sphi %s2021_s30, %s2592_s30   ;;  %s1903_s29 = sphi %s2019_s29, %s2591_s29  }
  0x17   : > { %2560 = sst [smem:[#allocation18_spill]] %s1911_s0  ;;  %p1555_p0 = scmp.ge.s32.totalorder %s1915_s19, 1 }
  0x18   : > { %2561 = sst [smem:[#allocation19_spill]] %s1915_s19  ;;  %p89_p1 = scmp.eq.s32.totalorder %s2043_s21, 0 }
  0x19   : > { %s2562_s15 = sld [smem:[#allocation31_spill]]  ;;  %p471_p2 = scmp.lt.s32.totalorder %s1915_s19, 3 }
  0x1a   : > { %s1917_s2 = smov [#allocation8]   ;;  %s1918_s24 = smov 128  }
  0x1b   : > { %p2048_p3 = pnand %p1555_p0, %p471_p2  ;;  %s520_s23 = sshll.u32 %s1917_s2, 4  ;;  %s521_s23 = int_to_ptr.vmem [resolvable:$true] %s520_s23 }
  0x1c   : > { %s1919_s25 = smov 8   ;;  %s1554_s26 = sadd.s32 4294967294, %s1915_s19  }
  0x1d   : > { %p1609_p4 = pneg %p2048_p3  ;;  %s2059_s27 = sadd.s32 1, %s1915_s19  }
  0x1e   : > { %2564 = sst [smem:[#allocation20_spill]] %s2059_s27  ;;  %s75_s28 = sadd.s32 1, %s1911_s0 }
  0x1f   : > { %s518_s20 = sshll.u32 %s2562_s15, 4  ;;  %p1610_p6 = pnand %p1609_p4, %p89_p1  ;;  %s519_s20 = int_to_ptr.hbm [resolvable:$true] %s518_s20 }
  0x20   : > { %s72_s14 = ssub.s32 %s1915_s19, %s2059_s27  ;;  %p82_p7 = scmp.ne.s32.totalorder %s1911_s0, %s1907_s30 }
  0x21   : > { %1612 = dma.hbm_to_vmem [thread:$0]  (!%p1610_p6), %s519_s20, 512, %s521_s23, [#allocation7], %s1918_s24, %s1918_s24, %s1919_s25  }
  0x22   : > { %p73_p8 = scmp.eq.s32.totalorder %s72_s14, 0  ;;  %p83_p9 = scmp.eq.s32.totalorder %s1915_s19, 0 }
  0x23   : > { %p88_p10 = scmp.ne.s32.totalorder %s1907_s30, %s1903_s29  ;;  %p432_p11 = scmp.eq.s32.totalorder %s2043_s21, 1 }
  0x24   : > { %s2071_s1 = scalar_select %p73_p8, %s1911_s0, %s75_s28  }
  0x25   : > { %p2073_p12 = por %p83_p9, %p82_p7  ;;  %p2079_p13 = por %p89_p1, %p88_p10 }
  0x26   : > { %2565 = sst [smem:[#allocation21_spill]] %s2071_s1  ;;  %p2083_p0 = por %p432_p11, %p82_p7 }
  0x27   : > { %p438_p2 = scmp.eq.s32.totalorder %s1554_s26, 1  ;;  %p1628_p4 = scmp.lt.s32.totalorder %s1915_s19, 2 }
  0x28   : > { %s2568_s23 = scalar_select %p2083_p0, 1, 0 }
  0x29   : > { %s546_s24 = sand.u32 1, %s1911_s0   ;;  %p2089_p6 = por %p438_p2, %p88_p10 }
  0x2a   : > { %2569 = sst [smem:[#allocation22_spill]] %s2568_s23  ;;  %s1558_s28 = sshll.u32 %s546_s24, 3 }
  0x2b   : > { %s2570_s25 = scalar_select %p2089_p6, 1, 0 }
  0x2c   : > { %s1559_s14 = sshll.u32 %s1915_s19, 3  ;;  %s2572_s27 = sld [smem:[#allocation25_spill]] }
  0x2d   : > { %2571 = sst [smem:[#allocation23_spill]] %s2570_s25  ;;  %s550_s16 = scalar_lea.vmem [#allocation3], %s1558_s28 }
  0x2e   : > { %s558_s18 = sshll.u32 %s550_s16, 4  ;;  %p2099_p7 = pnand %p1628_p4, %p2073_p12  ;;  %s559_s18 = int_to_ptr.vmem [resolvable:$true] %s558_s18 }
  0x2f   : > { %s2574_s8 = sld [smem:[#allocation26_spill]]  ;;  %s565_s13 = sand.u32 1, %s1915_s19  }
  0x30   : > { %s547_s12 = scalar_lea.sflag [#allocation4], %s546_s24  ;;  %p1753_p9 = pneg %p2099_p7 }
  0x32   : > { %s554_s29 = scalar_lea.hbm %s2572_s27, %s1559_s14  ;;  %s1756_s2 = scalar_lea.hbm %s2572_s27, 16 }
  0x33   : > { %s556_s17 = sshll.u32 %s554_s29, 4  ;;  %s557_s17 = int_to_ptr.hbm [resolvable:$true] %s556_s17 }
  0x34   : > { %s1749_s15 = sshra.s32 %s557_s17, 4  ;;  %s1750_s15 = int_to_ptr.hbm [resolvable:$true] %s1749_s15 }
  0x35   : > { %s573_s25 = scalar_lea.hbm %s2574_s8, %s1559_s14  ;;  %s1751_s29 = scalar_lea.hbm %s1750_s15, 8 }
  0x36   : > { %p1752_p8 = scmp.ne.s32.totalorder %s1750_s15, %s1751_s29  ;;  %p1757_p12 = scmp.lt.s32.totalorder %s1750_s15, %s2572_s27 }
  0x37   : > { %p1758_p2 = scmp.lt.s32.totalorder %s1756_s2, %s1751_s29 }
  0x38   : > { %p1754_p10 = pnand %p1753_p9, %p1752_p8 }
  0x39   : > { %p1759_p4 = por %p1758_p2, %p1757_p12 }
  0x3a   : > { %p1755_p11 = pneg %p1754_p10 }
  0x3c   : > { %p1760_p5 = pnand %p1759_p4, %p1755_p11 }
  0x3e   : > { %1763 = shalt.err (!%p1760_p5)
}
  0x3f   : > { %1616 = dma.hbm_to_vmem [thread:$0]  (!%p2099_p7), %s557_s17, 128, %s559_s18, %s547_s12  }
  0x40   : > { %s575_s24 = sshll.u32 %s573_s25, 4  ;;  %s569_s14 = scalar_lea.vmem [#allocation6], %s1558_s28  ;;  %s576_s24 = int_to_ptr.hbm [resolvable:$true] %s575_s24 }
  0x41   : > { %s577_s19 = sshll.u32 %s569_s14, 4  ;;  %s566_s10 = scalar_lea.sflag [#allocation7], %s565_s13  ;;  %s578_s19 = int_to_ptr.vmem [resolvable:$true] %s577_s19 }
  0x42   : > { %s1779_s16 = sshra.s32 %s576_s24, 4  ;;  %s1786_s2 = scalar_lea.hbm %s2574_s8, 16  ;;  %s1780_s16 = int_to_ptr.hbm [resolvable:$true] %s1779_s16 }
  0x43   : > { %s1781_s1 = scalar_lea.hbm %s1780_s16, 8  ;;  %p1787_p5 = scmp.lt.s32.totalorder %s1780_s16, %s2574_s8 }
  0x44   : > { %p1782_p8 = scmp.ne.s32.totalorder %s1780_s16, %s1781_s1  ;;  %p1788_p11 = scmp.lt.s32.totalorder %s1786_s2, %s1781_s1 }
  0x46   : > { %p1784_p10 = pnand %p1782_p8, %p1753_p9  ;;  %p1789_p2 = por %p1788_p11, %p1787_p5 }
  0x48   : > { %p1785_p12 = pneg %p1784_p10 }
  0x4a   : > { %p1790_p4 = pnand %p1789_p2, %p1785_p12 }
  0x4c   : > { %1793 = shalt.err (!%p1790_p4)
}
  0x4d   : > { %1619 = dma.hbm_to_vmem [thread:$0]  (!%p2099_p7), %s576_s24, 128, %s578_s19, %s566_s10  }
  0x4e   : > { %586 = sbr.rel (%p2048_p3) target bundleno = 1232 (0x4d0), region = 88  ;;  %s2134_s13 = sand.u32 (!%p2048_p3), 1, %s1907_s30  }
  0x4f   : > { %s2137_s17 = sshll.u32 (!%p2048_p3), %s2134_s13, 3  ;;  %s589_s18 = scalar_lea.sflag (!%p2048_p3), [#allocation4], %s2134_s13 }
  0x50   : > { %s592_s25 = scalar_lea.vmem (!%p2048_p3), [#allocation3], %s2137_s17 }
  0x53   : > { %1882 = dma.done.wait (%p2079_p13), %s589_s18, 128  }
  0x54   : > { %1884 = vsyncadd (%p2079_p13), %s589_s18, 4294967168  ;;  %s598_s10 = sand.u32 1, %s2043_s21   ;;  %s602_s22 = scalar_lea.vmem [#allocation6], %s2137_s17 }
  0x55   : > { %s599_s19 = scalar_lea.sflag [#allocation7], %s598_s10 }
  0x56   : > { %1886 = dma.done.wait (%p2079_p13), %s599_s19, 128  }
  0x57   : > { %1888 = vsyncadd (%p2079_p13), %s599_s19, 4294967168 }
  0x58   : > { %1890 = dma.done.wait (%p89_p1), [#allocation7], 512  }
  0x59   : > { %1892 = vsyncadd (%p89_p1), [#allocation7], 4294966784  ;;  %v686_v0 = vld [vmem:[%s2520_s3 + $0x18] sm:$0xff]  ;;  %v685_v1 = vld [vmem:[%s2520_s3 + $0x10] sm:$0xff]  ;;  %vm691_vm0 = vcmask 261120   ;;  %s2185_s26 = sshll.u32 %s2043_s21, 3 }
  0x5a   : > { %707 = vmatpush.msra.mxu1 %v686_v0  ;;  %v684_v2 = vld [vmem:[%s2520_s3 + $0x8] sm:$0xff]  ;;  %v683_v3 = vld [vmem:[%s2520_s3] sm:$0xff]  ;;  %v783_v4 = vld [vmem:[%s2524_s7 + $0x18] sm:$0xff]  ;;  %p677_p1 = scmp.lt.s32.totalorder %s2185_s26, 15  ;;  %s2577_s14 = sld [smem:[#allocation29_spill]]  ;;  %vm1003_vm1 = vcmask 1041409  }
  0x5b   : > { %v682_v5 = vld [vmem:[%s602_s22] sm:$0xff]  ;;  %803 = vmatpush.msra.mxu3 %v783_v4  ;;  %v718_v8 = vld [vmem:[%s2522_s5 + $0x8] sm:$0xff]  ;;  %v717_v9 = vld [vmem:[%s2522_s5] sm:$0xff]  ;;  %s2575_s22 = sld [smem:[#allocation24_spill]]  ;;  %vm1005_vm2 = vcmask 1042434   ;;  %vm1007_vm3 = vcmask 1043459  }
  0x5c   : > { %708 = vmatpush.msra.mxu1 %v685_v1  ;;  %v720_v6 = vld [vmem:[%s2522_s5 + $0x18] sm:$0xff]  ;;  %v719_v7 = vld [vmem:[%s2522_s5 + $0x10] sm:$0xff]  ;;  %v716_v10 = vld [vmem:[%s592_s25] sm:$0xff]  ;;  %s678_s20 = scalar_select %p677_p1, %s2185_s26, 15  ;;  %vm1009_vm4 = vcmask 1044484   ;;  %vm1011_vm5 = vcmask 1045509  }
  0x5d   : > { %v782_v11 = vld [vmem:[%s2524_s7 + $0x10] sm:$0xff]  ;;  %v781_v12 = vld [vmem:[%s2524_s7 + $0x8] sm:$0xff]  ;;  %v780_v13 = vld [vmem:[%s2524_s7] sm:$0xff]  ;;  %s2579_s21 = sld [smem:[#allocation27_spill]]  ;;  %vm1013_vm6 = vcmask 1046534   ;;  %vm1015_vm7 = vcmask 1047559  }
  0x5e   : > { %709 = vmatpush.msra.mxu1 %v684_v2  ;;  %804 = vmatpush.msra.mxu3 %v782_v11  ;;  %v822_v14 = vld [vmem:[%s2528_s11 + $0x18] sm:$0xff]  ;;  %v821_v15 = vld [vmem:[%s2528_s11 + $0x10] sm:$0xff]  ;;  %s1569_s0 = sshll.u32 %s678_s20, 3  ;;  %v820_v16 = vld [vmem:[%s2528_s11 + $0x8] sm:$0xff]  ;;  %s2578_s20 = sld [smem:[#allocation30_spill]]  ;;  %vm1018_vm8 = vcmask 64512  }
  0x5f   : > { %863 = vmatpush.msra.mxu0 %v822_v14  ;;  %v752_v17 = vld [vmem:[%s2526_s9 + $0x18] sm:$0xff]  ;;  %v819_v18 = vld [vmem:[%s2528_s11] sm:$0xff]  ;;  %v751_v20 = vld [vmem:[%s2526_s9 + $0x10] sm:$0xff]  ;;  %s935_s15 = sld [smem:[#allocation2]]  ;;  %vm1369_vm9 = vcmask 72704   ;;  %s675_s29 = scalar_lea.vmem [#allocation10], %s2137_s17 }
  0x60   : > { %710 = vmatpush.msra.mxu1 %v683_v3  ;;  %805 = vmatpush.msra.mxu3 %v781_v12  ;;  %v750_v21 = vld [vmem:[%s2526_s9 + $0x8] sm:$0xff]  ;;  %v749_v22 = vld [vmem:[%s2526_s9] sm:$0xff]  ;;  %s2581_s18 = sld [smem:[#allocation34_spill]]  ;;  %s1404_s19 = sshll.u32 %s675_s29, 4  ;;  %s1405_s19 = int_to_ptr.vmem [resolvable:$true] %s1404_s19 }
  0x61   : > { %1570 = vmatmul.msk.f32.vlgmr.msra.gmra.mxu1 %vm691_vm0, %v682_v5  ;;  %864 = vmatpush.msra.mxu0 %v821_v15  ;;  %s2210_s28 = scalar_lea.vmem %s2575_s22, %s1569_s0  ;;  %v1670_v25 = vld [vmem:[%s2521_s4] ss:$0 sm:$0xff]  ;;  %s2576_s22 = sld [smem:[#allocation28_spill]] }
  0x62   : > { %740 = vmatpush.msrb.mxu1 %v720_v6  ;;  %806 = vmatpush.msra.mxu3 %v780_v13  ;;  %v2219_v19 = vld [vmem:[%s2210_s28] sm:$0xff]  ;;  %v2233_v23 = vld [vmem:[%s2210_s28 + $0x8] sm:$0xff]  ;;  %v2238_v24 = vld [vmem:[%s2210_s28 + $0x10] sm:$0xff]  ;;  %s1378_s23 = scalar_lea.sflag [#allocation11], %s2134_s13 }
  0x63   : > { %865 = vmatpush.msra.mxu0 %v820_v16  ;;  %772 = vmatpush.msra.mxu2 %v752_v17  ;;  %v1671_v29 = vld [vmem:[%s2523_s6] ss:$0 sm:$0xff]  ;;  %v2255_v32 = vld [vmem:[%s2210_s28 + $0x30] sm:$0xff]  ;;  %v2264_v34 = vld [vmem:[%s2210_s28 + $0x38] sm:$0xff] }
  0x64   : > { %741 = vmatpush.msrb.mxu1 %v719_v7  ;;  %1590 = vmatpush.msrb.mxu3 %v822_v14  ;;  %v2269_v35 = vld [vmem:[%s2210_s28 + $0x18] sm:$0xff]  ;;  %v2274_v36 = vld [vmem:[%s2210_s28 + $0x20] sm:$0xff]  ;;  %v2279_v37 = vld [vmem:[%s2210_s28 + $0x28] sm:$0xff] }
  0x65   : > { %866 = vmatpush.msra.mxu0 %v819_v18  ;;  %773 = vmatpush.msra.mxu2 %v751_v20  ;;  %v1673_v43 = vld [vmem:[%s2577_s14] ss:$0 sm:$0xff] }
  0x66   : > { %742 = vmatpush.msrb.mxu1 %v718_v8  ;;  %1592 = vmatpush.msrb.mxu3 %v821_v15  ;;  %v1675_v7 = vld [vmem:[%s2578_s20] ss:$0 sm:$0xff]  ;;  %s1402_s10 = scalar_lea.hbm %s2581_s18, %s2185_s26  ;;  %s1829_s20 = scalar_lea.hbm %s2581_s18, 16 }
  0x67   : > { %1574 = vmatmul.msk.f32.vlgmr.msra.gmra.mxu0 %vm691_vm0, %v2219_v19  ;;  %774 = vmatpush.msra.mxu2 %v750_v21  ;;  %v1674_v41 = vld [vmem:[%s2576_s22] ss:$0 sm:$0xff]  ;;  %s1406_s22 = sshll.u32 %s1402_s10, 4  ;;  %s1407_s22 = int_to_ptr.hbm [resolvable:$true] %s1406_s22 }
  0x68   : > { %743 = vmatpush.msrb.mxu1 %v717_v9  ;;  %1594 = vmatpush.msrb.mxu3 %v820_v16  ;;  %s1823_s24 = sshra.s32 %s1407_s22, 4  ;;  %s1824_s24 = int_to_ptr.hbm [resolvable:$true] %s1823_s24 }
  0x69   : > { %1571 = vmatmul.msk.f32.vlgmr.msrb.gmra.mxu1 %vm691_vm0, %v716_v10  ;;  %775 = vmatpush.msra.mxu2 %v749_v22  ;;  %s1825_s14 = scalar_lea.hbm %s1824_s24, 8  ;;  %p1830_p9 = scmp.lt.s32.totalorder %s1824_s24, %s2581_s18 }
  0x6a   : > { %1596 = vmatpush.msrb.mxu3 %v819_v18  ;;  %p1826_p3 = scmp.ne.s32.totalorder %s1824_s24, %s1825_s14  ;;  %p1831_p8 = scmp.lt.s32.totalorder %s1829_s20, %s1825_s14 }
  0x6b   : > { %1589 = vmatpush.msrb.mxu2 %v822_v14 }
  0x6c   : > { %p1827_p13 = pnand %p1826_p3, %p2083_p0  ;;  %p1832_p10 = por %p1831_p8, %p1830_p9 }
  0x6d   : > { %1591 = vmatpush.msrb.mxu2 %v821_v15 }
  0x6e   : > { %p1828_p7 = pneg %p1827_p13 }
  0x6f   : > { %1575 = vmatmul.msk.f32.gmra.mxu0 %vm691_vm0, %v2233_v23  ;;  %1593 = vmatpush.msrb.mxu2 %v820_v16 }
  0x70   : > { %p1833_p12 = pnand %p1832_p10, %p1828_p7 }
  0x71   : > { %1595 = vmatpush.msrb.mxu2 %v819_v18 }
  0x77   : > { %1576 = vmatmul.msk.f32.gmra.mxu0 %vm691_vm0, %v2238_v24 }
  0xde   : > { %v712_v26 = vpop.f32.mrf.mxu1 }
  0xdf   : > { %v2245_v27 = vadd.f32 %v1670_v25, %v712_v26 }
  0xe1   : > { %v715_v28 = vmax.f32 %v2245_v27, 0.0 }
  0xe3   : > { %1573 = vmatmul.msk.f32.vlgmr.msra.gmra.mxu3 %vm691_vm0, %v715_v28 }
  0xe4   : > { %v868_v38 = vpop.f32.mrf.mxu0 }
  0xe5   : > { %v869_v49 = vadd.f32 %v1673_v43, %v868_v38 }
  0xe6   : > { %v745_v30 = vpop.f32.mrf.mxu1 }
  0xe7   : > { %v746_v31 = vadd.f32 %v1671_v29, %v745_v30  ;;  %v1672_v30 = vld [vmem:[%s2579_s21] ss:$0 sm:$0xff] }
  0xe9   : > { %1677 = vtanh.f32 %v746_v31 }
  0xeb   : > { %1580 = vmatmul.msk.f32.vlgmr.msrb.gmra.mxu3 %vm691_vm0, %v2255_v32 }
  0xec   : > { %v871_v40 = vpop.f32.mrf.mxu0 }
  0xed   : > { %v872_v54 = vadd.f32 %v1673_v43, %v871_v40 }
  0xef   : > { %v2259_v33 = vpop.eup %1677 }
  0xf0   : > { %1572 = vmatmul.msk.f32.vlgmr.msra.gmra.mxu2 %vm691_vm0, %v2259_v33  ;;  %v1276_v27 = vrot.slane %v2259_v33, 2 }
  0xf3   : > { %1581 = vmatmul.msk.f32.gmra.mxu3 %vm691_vm0, %v2264_v34 }
  0xf4   : > { %v874_v45 = vpop.f32.mrf.mxu0 }
  0xf5   : > { %v875_v47 = vadd.f32 %v1673_v43, %v874_v45 }
  0xf8   : > { %1577 = vmatmul.msk.f32.vlgmr.msrb.gmra.mxu2 %vm691_vm0, %v2269_v35 }
 0x100   : > { %1578 = vmatmul.msk.f32.gmra.mxu2 %vm691_vm0, %v2274_v36 }
 0x108   : > { %1579 = vmatmul.msk.f32.gmra.mxu2 %vm691_vm0, %v2279_v37 }
 0x166   : > { %v2283_v39 = vpop.f32.mrf.mxu3 }
 0x16e   : > { %v886_v42 = vpop.f32.mrf.mxu3 }
 0x16f   : > { %v887_v4 = vadd.f32 %v1673_v43, %v886_v42 }
 0x173   : > { %v777_v44 = vpop.f32.mrf.mxu2 }
 0x174   : > { %v2291_v46 = vadd.f32 %v1674_v41, %v777_v44 }
 0x176   : > { %v894_v48 = vrot.slane %v2291_v46, 2  ;;  %v900_v50 = vperm.slane %v2291_v46, 0  ;;  %v893_v51 = vrot.slane %v2291_v46, 1  ;;  %v895_v53 = vrot.slane %v2291_v46, 3  ;;  %v889_v59 = vpop.f32.mrf.mxu3 }
 0x177   : > { %v899_v58 = vrot.slane %v2291_v46, 7  ;;  %v898_v62 = vrot.slane %v2291_v46, 6  ;;  %v890_v1 = vadd.f32 %v1673_v43, %v889_v59  ;;  %v896_v6 = vrot.slane %v2291_v46, 4 }
 0x178   : > { %v902_v52 = vperm.slane %v894_v48, 0  ;;  %v916_v55 = vadd.f32 %v900_v50, %v869_v49  ;;  %v901_v56 = vperm.slane %v893_v51, 0  ;;  %v903_v0 = vperm.slane %v895_v53, 0 }
 0x179   : > { %v907_v2 = vperm.slane %v899_v58, 0  ;;  %v906_v5 = vperm.slane %v898_v62, 0  ;;  %v904_v16 = vperm.slane %v896_v6, 0  ;;  %v897_v25 = vrot.slane %v2291_v46, 5 }
 0x17a   : > { %v918_v57 = vadd.f32 %v902_v52, %v875_v47  ;;  %1679 = vtanh.f32 %v916_v55  ;;  %v917_v61 = vadd.f32 %v901_v56, %v872_v54  ;;  %v809_v48 = vadd.f32 %v1672_v30, %v2283_v39 }
 0x17b   : > { %v877_v60 = vpop.f32.mrf.mxu2  ;;  %v923_v10 = vadd.f32 %v907_v2, %v890_v1  ;;  %v922_v14 = vadd.f32 %v906_v5, %v887_v4  ;;  %v905_v41 = vperm.slane %v897_v25, 0  ;;  %v993_v62 = vlaneseq }
 0x17c   : > { %1681 = vtanh.f32 %v918_v57  ;;  %v878_v63 = vadd.f32 %v1673_v43, %v877_v60  ;;  %v932_v52 = vadd.f32 %v809_v48, %v2291_v46 }
 0x17d   : > { %1683 = vtanh.f32 %v917_v61 }
 0x17e   : > { %v919_v3 = vadd.f32 %v903_v0, %v878_v63  ;;  %v971_v0 = vstv %s935_s15 }
 0x180   : > { %1685 = vtanh.f32 %v919_v3  ;;  %v1680_v8 = vpop.eup %1679  ;;  %v2318_v3 = vand.u32 127, %v993_v62 }
 0x181   : > { %v939_v11 = vmul.f32 %v1680_v8, %v1675_v7  ;;  %1687 = vtanh.f32 %v923_v10 }
 0x182   : > { %v1682_v9 = vpop.eup %1681  ;;  %1689 = vtanh.f32 %v922_v14 }
 0x183   : > { %v880_v12 = vpop.f32.mrf.mxu2  ;;  %v941_v13 = vmul.f32 %v1682_v9, %v1675_v7  ;;  %v947_v17 = vsel %vm691_vm0, %v939_v11, 0.0  ;;  %v1684_v18 = vpop.eup %1683 }
 0x184   : > { %v881_v15 = vadd.f32 %v1673_v43, %v880_v12  ;;  %948 = vadd.xlane.f32.xlu0 %v947_v17  ;;  %v940_v26 = vmul.f32 %v1684_v18, %v1675_v7 }
 0x185   : > { %v953_v20 = vsel %vm691_vm0, %v941_v13, 0.0 }
 0x186   : > { %v1686_v21 = vpop.eup %1685  ;;  %v920_v22 = vadd.f32 %v904_v16, %v881_v15  ;;  %954 = vadd.xlane.f32.xlu1 %v953_v20  ;;  %v950_v42 = vsel %vm691_vm0, %v940_v26, 0.0 }
 0x187   : > { %v942_v29 = vmul.f32 %v1686_v21, %v1675_v7  ;;  %v1688_v38 = vpop.eup %1687 }
 0x188   : > { %1691 = vtanh.f32 %v920_v22  ;;  %v1690_v44 = vpop.eup %1689 }
 0x189   : > { %v956_v45 = vsel %vm691_vm0, %v942_v29, 0.0  ;;  %v945_v51 = vmul.f32 %v1690_v44, %v1675_v7  ;;  %v1920_v44 = vmov 0  }
 0x18a   : > { %1669 = vset.pattern.permute.xlu0 %v1920_v44  ;;  %1668 = vset.pattern.permute.xlu2 %v1920_v44 }
 0x18b   : > { %v883_v31 = vpop.f32.mrf.mxu2  ;;  %v965_v54 = vsel %vm691_vm0, %v945_v51, 0.0  ;;  %1667 = vset.pattern.permute.xlu1 %v1920_v44 }
 0x18c   : > { %v884_v40 = vadd.f32 %v1673_v43, %v883_v31  ;;  %951 = vadd.xlane.f32.xlu0 %v950_v42  ;;  %v946_v43 = vmul.f32 %v1688_v38, %v1675_v7 }
 0x18e   : > { %v1692_v47 = vpop.eup %1691  ;;  %v921_v49 = vadd.f32 %v905_v41, %v884_v40  ;;  %957 = vadd.xlane.f32.xlu1 %v956_v45  ;;  %v968_v55 = vsel %vm691_vm0, %v946_v43, 0.0 }
 0x18f   : > { %v943_v50 = vmul.f32 %v1692_v47, %v1675_v7 }
 0x190   : > { %1693 = vtanh.f32 %v921_v49 }
 0x191   : > { %v959_v53 = vsel %vm691_vm0, %v943_v50, 0.0  ;;  %1695 = vtanh.f32 %v932_v52 }
 0x192   : > { %960 = vadd.xlane.f32.xlu2 %v959_v53 }
 0x194   : > { %966 = vadd.xlane.f32.xlu0 %v965_v54 }
 0x196   : > { %v1694_v56 = vpop.eup %1693  ;;  %969 = vadd.xlane.f32.xlu1 %v968_v55 }
 0x197   : > { %v944_v39 = vmul.f32 %v1694_v56, %v1675_v7  ;;  %v1696_v58 = vpop.eup %1695 }
 0x198   : > { %v980_v59 = vmul.f32 %v1696_v58, %v1675_v7 }
 0x199   : > { %v962_v57 = vsel %vm691_vm0, %v944_v39, 0.0 }
 0x19a   : > { %963 = vadd.xlane.f32.xlu2 %v962_v57  ;;  %v981_v46 = vsel %vm691_vm0, %v980_v59, 0.0 }
 0x1a2   : > { %982 = vadd.xlane.f32.xlu2 %v981_v46 }
 0x1f7   : > { %v949_v60 = vpop.xlane.xlu0 %948 }
 0x1f8   : > { %v972_v4 = vadd.f32 %v971_v0, %v949_v60 }
 0x1f9   : > { %v955_v61 = vpop.xlane.xlu1 %954 }
 0x1fa   : > { %v974_v8 = vadd.f32 %v971_v0, %v955_v61  ;;  %v995_v7 = vperm.slane %v972_v4, %v2318_v3 }
 0x1fc   : > { %v997_v13 = vperm.slane %v974_v8, %v2318_v3 }
 0x1ff   : > { %v952_v63 = vpop.xlane.xlu0 %951 }
 0x200   : > { %v973_v2 = vadd.f32 %v971_v0, %v952_v63 }
 0x201   : > { %v958_v1 = vpop.xlane.xlu1 %957 }
 0x202   : > { %v996_v6 = vperm.slane %v973_v2, %v2318_v3  ;;  %v975_v9 = vadd.f32 %v971_v0, %v958_v1 }
 0x204   : > { %v1004_v11 = vsel %vm1003_vm1, %v996_v6, %v995_v7  ;;  %v998_v15 = vperm.slane %v975_v9, %v2318_v3 }
 0x205   : > { %v961_v5 = vpop.xlane.xlu2 %960  ;;  %v1006_v16 = vsel %vm1005_vm2, %v997_v13, %v1004_v11 }
 0x206   : > { %v976_v10 = vadd.f32 %v971_v0, %v961_v5  ;;  %v1008_v25 = vsel %vm1007_vm3, %v998_v15, %v1006_v16 }
 0x207   : > { %v967_v12 = vpop.xlane.xlu0 %966 }
 0x208   : > { %v999_v17 = vperm.slane %v976_v10, %v2318_v3  ;;  %v978_v18 = vadd.f32 %v971_v0, %v967_v12 }
 0x209   : > { %v970_v14 = vpop.xlane.xlu1 %969 }
 0x20a   : > { %v2327_v21 = vadd.f32 %v971_v0, %v970_v14  ;;  %v1010_v29 = vsel %vm1009_vm4, %v999_v17, %v1008_v25  ;;  %v1001_v30 = vperm.slane %v978_v18, %v2318_v3 }
 0x20c   : > { %v1002_v31 = vperm.slane %v2327_v21, %v2318_v3 }
 0x20d   : > { %v964_v20 = vpop.xlane.xlu2 %963 }
 0x20e   : > { %v977_v22 = vadd.f32 %v971_v0, %v964_v20 }
 0x210   : > { %v1000_v26 = vperm.slane %v977_v22, %v2318_v3 }
 0x212   : > { %v1012_v38 = vsel %vm1011_vm5, %v1000_v26, %v1010_v29 }
 0x213   : > { %v1014_v40 = vsel %vm1013_vm6, %v1001_v30, %v1012_v38 }
 0x214   : > { %v1016_v41 = vsel %vm1015_vm7, %v1002_v31, %v1014_v40 }
 0x215   : > { %v1019_v42 = vsel %vm1018_vm8, %v1016_v41, -inf  ;;  %v983_v45 = vpop.xlane.xlu2 %982 }
 0x216   : > { %1020 = vmax.xlane.f32.xlu0 %v1019_v42  ;;  %v2339_v47 = vadd.f32 %v983_v45, %v971_v0 }
 0x289   : > { %v1021_v48 = vpop.xlane.xlu0 %1020 }
 0x28a   : > { %v2342_v49 = vmax.f32 %v1021_v48, %v2339_v47 }
 0x28c   : > { %v1026_v50 = vperm.slane %v2342_v49, 2  ;;  %v1025_v51 = vperm.slane %v2342_v49, 1  ;;  %v1024_v52 = vperm.slane %v2342_v49, 0  ;;  %v1027_v55 = vperm.slane %v2342_v49, 3 }
 0x28d   : > { %v1028_v56 = vperm.slane %v2342_v49, 4  ;;  %v1064_v59 = vsub.f32 %v2339_v47, %v2342_v49  ;;  %v1029_v62 = vperm.slane %v2342_v49, 5  ;;  %v1030_v1 = vperm.slane %v2342_v49, 6 }
 0x28e   : > { %v1042_v53 = vsub.f32 %v974_v8, %v1026_v50  ;;  %v1041_v43 = vsub.f32 %v973_v2, %v1025_v51  ;;  %v1040_v54 = vsub.f32 %v972_v4, %v1024_v52  ;;  %v1043_v46 = vsub.f32 %v975_v9, %v1027_v55 }
 0x28f   : > { %v1044_v60 = vsub.f32 %v976_v10, %v1028_v56  ;;  %v1045_v5 = vsub.f32 %v977_v22, %v1029_v62  ;;  %v1046_v6 = vsub.f32 %v978_v18, %v1030_v1  ;;  %v1031_v7 = vperm.slane %v2342_v49, 7 }
 0x290   : > { %v1052_v39 = vmul.f32 1.442695, %v1042_v53  ;;  %v1050_v57 = vmul.f32 1.442695, %v1041_v43  ;;  %v1048_v58 = vmul.f32 1.442695, %v1040_v54 }
 0x291   : > { %v1054_v61 = vmul.f32 1.442695, %v1043_v46  ;;  %v1056_v0 = vmul.f32 1.442695, %v1044_v60  ;;  %v1058_v8 = vmul.f32 1.442695, %v1045_v5  ;;  %v1047_v12 = vsub.f32 %v2327_v21, %v1031_v7 }
 0x292   : > { %1697 = vpow2.f32 %v1052_v39  ;;  %v1060_v9 = vmul.f32 1.442695, %v1046_v6  ;;  %v1065_v54 = vmul.f32 1.442695, %v1064_v59 }
 0x293   : > { %1699 = vpow2.f32 %v1050_v57  ;;  %v1062_v13 = vmul.f32 1.442695, %v1047_v12 }
 0x294   : > { %1701 = vpow2.f32 %v1048_v58 }
 0x295   : > { %1703 = vpow2.f32 %v1054_v61 }
 0x296   : > { %1705 = vpow2.f32 %v1056_v0 }
 0x297   : > { %1707 = vpow2.f32 %v1058_v8 }
 0x298   : > { %v2352_v63 = vpop.eup %1697  ;;  %1709 = vpow2.f32 %v1060_v9 }
 0x299   : > { %v2355_v2 = vpop.eup %1699  ;;  %1082 = vperm.xlu0 %1669, %v2352_v63   ;;  %1711 = vpow2.f32 %v1062_v13 }
 0x29a   : > { %v2358_v4 = vpop.eup %1701  ;;  %1079 = vperm.xlu2 %1668, %v2355_v2   ;;  %1713 = vpow2.f32 %v1065_v54 }
 0x29b   : > { %1076 = vperm.xlu1 %1667, %v2358_v4   ;;  %v1704_v10 = vpop.eup %1703 }
 0x29c   : > { %v1706_v11 = vpop.eup %1705 }
 0x29d   : > { %v1708_v14 = vpop.eup %1707 }
 0x29e   : > { %v1710_v15 = vpop.eup %1709 }
 0x29f   : > { %v1712_v16 = vpop.eup %1711 }
 0x2a0   : > { %v1714_v55 = vpop.eup %1713 }
 0x2a2   : > { %1085 = vperm.xlu2 %1668, %v1704_v10  }
 0x2a3   : > { %1088 = vperm.xlu1 %1667, %v1706_v11  }
 0x2aa   : > { %1091 = vperm.xlu2 %1668, %v1708_v14  }
 0x2ab   : > { %1094 = vperm.xlu1 %1667, %v1710_v15  }
 0x2b2   : > { %1097 = vperm.xlu2 %1668, %v1712_v16  }
 0x2f4   : > { %v1080_v17 = vpop.permute.xlu2 %1079 }
 0x2f5   : > { %v1100_v29 = vperm.slane %v1080_v17, %v2318_v3 }
 0x2fc   : > { %v1086_v18 = vpop.permute.xlu2 %1085 }
 0x2fd   : > { %v1102_v41 = vperm.slane %v1086_v18, %v2318_v3 }
 0x304   : > { %v1092_v26 = vpop.permute.xlu2 %1091 }
 0x305   : > { %v1104_v47 = vperm.slane %v1092_v26, %v2318_v3 }
 0x30b   : > { %v1083_v22 = vpop.permute.xlu0 %1082 }
 0x30c   : > { %v1101_v21 = vperm.slane %v1083_v22, %v2318_v3  ;;  %v1098_v44 = vpop.permute.xlu2 %1097 }
 0x30d   : > { %v1077_v20 = vpop.permute.xlu1 %1076  ;;  %v1106_v50 = vperm.slane %v1098_v44, %v2318_v3 }
 0x30e   : > { %v1099_v25 = vperm.slane %v1077_v20, %v2318_v3 }
 0x310   : > { %v1107_v30 = vsel %vm1003_vm1, %v1100_v29, %v1099_v25 }
 0x311   : > { %v1108_v38 = vsel %vm1005_vm2, %v1101_v21, %v1107_v30 }
 0x312   : > { %v1109_v42 = vsel %vm1007_vm3, %v1102_v41, %v1108_v38 }
 0x315   : > { %v1089_v31 = vpop.permute.xlu1 %1088 }
 0x316   : > { %v1103_v40 = vperm.slane %v1089_v31, %v2318_v3 }
 0x318   : > { %v1110_v45 = vsel %vm1009_vm4, %v1103_v40, %v1109_v42 }
 0x319   : > { %v1111_v51 = vsel %vm1011_vm5, %v1104_v47, %v1110_v45 }
 0x31d   : > { %v1095_v48 = vpop.permute.xlu1 %1094 }
 0x31e   : > { %v1105_v49 = vperm.slane %v1095_v48, %v2318_v3 }
 0x320   : > { %v1112_v52 = vsel %vm1013_vm6, %v1105_v49, %v1111_v51  ;;  %v1300_v51 = vld [vmem:[#allocation8 + $0x10] sm:$0xff] }
 0x321   : > { %v1113_v53 = vsel %vm1015_vm7, %v1106_v50, %v1112_v52 }
 0x322   : > { %v1115_v43 = vsel %vm1018_vm8, %v1113_v53, 0.0 }
 0x323   : > { %1116 = vadd.xlane.f32.xlu1 %v1115_v43 }
 0x396   : > { %v1117_v56 = vpop.xlane.xlu1 %1116 }
 0x397   : > { %v1118_v39 = vadd.f32 %v1714_v55, %v1117_v56 }
 0x399   : > { %1715 = vrcp.f32 %v1118_v39 }
 0x39f   : > { %v1716_v57 = vpop.eup %1715 }
 0x3a0   : > { %v2380_v58 = vmul.f32 %v1716_v57, %v1714_v55  ;;  %v1123_v46 = vperm.slane %v1716_v57, 2  ;;  %v1122_v60 = vperm.slane %v1716_v57, 1  ;;  %v1124_v0 = vperm.slane %v1716_v57, 3 }
 0x3a1   : > { %v1121_v1 = vperm.slane %v1716_v57, 0  ;;  %v1126_v6 = vperm.slane %v1716_v57, 5  ;;  %v1125_v8 = vperm.slane %v1716_v57, 4  ;;  %v1128_v12 = vperm.slane %v1716_v57, 7 }
 0x3a2   : > { %v1139_v61 = vmul.f32 %v2352_v63, %v1123_v46  ;;  %v1138_v62 = vmul.f32 %v2355_v2, %v1122_v60  ;;  %v1140_v5 = vmul.f32 %v1704_v10, %v1124_v0  ;;  %v1127_v13 = vperm.slane %v1716_v57, 6 }
 0x3a3   : > { %v1137_v59 = vmul.f32 %v2358_v4, %v1121_v1  ;;  %v1142_v7 = vmul.f32 %v1708_v14, %v1126_v6  ;;  %v1141_v9 = vmul.f32 %v1706_v11, %v1125_v8  ;;  %v1144_v63 = vmul.f32 %v1712_v16, %v1128_v12 }
 0x3a4   : > { %1158 = vperm.xlu2 %1668, %v1139_v61   ;;  %1153 = vperm.xlu0 %1669, %v1138_v62   ;;  %v1143_v17 = vmul.f32 %v1710_v15, %v1127_v13  ;;  %v1298_v61 = vld [vmem:[#allocation8] sm:$0xff] }
 0x3ac   : > { %1163 = vperm.xlu2 %1668, %v1140_v5   ;;  %1148 = vperm.xlu0 %1669, %v1137_v59   ;;  %v2414_v59 = vmul.f32 %v2380_v58, %v715_v28 }
 0x3b4   : > { %1173 = vperm.xlu2 %1668, %v1142_v7   ;;  %1168 = vperm.xlu0 %1669, %v1141_v9  }
 0x3bc   : > { %1183 = vperm.xlu2 %1668, %v1144_v63   ;;  %1178 = vperm.xlu0 %1669, %v1143_v17  }
 0x3fe   : > { %v1159_v2 = vpop.permute.xlu2 %1158 }
 0x3ff   : > { %v1188_v4 = vmul.f32 %v1159_v2, %v2238_v24  ;;  %v1354_v62 = vperm.slane %v1159_v2, %v2318_v3 }
 0x401   : > { %v1208_v11 = vsel %vm691_vm0, %v1188_v4, 0.0 }
 0x402   : > { %v1209_v29 = vrot.slane %v1208_v11, 4 }
 0x404   : > { %v1210_v38 = vadd.f32 %v1209_v29, %v1208_v11 }
 0x406   : > { %v2385_v18 = vpop.permute.xlu2 %1163  ;;  %v1211_v47 = vrot.slane %v1210_v38, 2 }
 0x407   : > { %v1189_v20 = vmul.f32 %v2385_v18, %v2269_v35  ;;  %v1355_v7 = vperm.slane %v2385_v18, %v2318_v3 }
 0x408   : > { %v1212_v56 = vadd.f32 %v1211_v47, %v1210_v38 }
 0x409   : > { %v1215_v22 = vsel %vm691_vm0, %v1189_v20, 0.0 }
 0x40a   : > { %v1216_v21 = vrot.slane %v1215_v22, 4  ;;  %v1213_v63 = vrot.slane %v1212_v56, 1 }
 0x40c   : > { %v1217_v40 = vadd.f32 %v1216_v21, %v1215_v22  ;;  %v1253_v22 = vrot.slane %v2414_v59, 2  ;;  %v1214_v29 = vadd.f32 %v1213_v63, %v1212_v56  ;;  %v1279_v63 = vrot.slane %v2259_v33, 5 }
 0x40e   : > { %v2387_v10 = vpop.permute.xlu2 %1173  ;;  %v1218_v48 = vrot.slane %v1217_v40, 2 }
 0x40f   : > { %v1191_v15 = vmul.f32 %v2387_v10, %v2279_v37 }
 0x410   : > { %v1219_v39 = vadd.f32 %v1218_v48, %v1217_v40  ;;  %v1269_v48 = vadd.f32 %v1253_v22, %v1214_v29 }
 0x411   : > { %v1229_v31 = vsel %vm691_vm0, %v1191_v15, 0.0 }
 0x412   : > { %v1230_v37 = vrot.slane %v1229_v31, 4 }
 0x414   : > { %v1231_v43 = vadd.f32 %v1230_v37, %v1229_v31 }
 0x416   : > { %v1154_v14 = vpop.permute.xlu0 %1153  ;;  %v2397_v25 = vpop.permute.xlu2 %1183  ;;  %v1232_v6 = vrot.slane %v1231_v43, 2 }
 0x417   : > { %v1187_v16 = vmul.f32 %v1154_v14, %v2233_v23  ;;  %v1193_v35 = vmul.f32 %v2397_v25, %v2264_v34  ;;  %v1301_v34 = vld [vmem:[#allocation8 + $0x18] sm:$0xff]  ;;  %v1353_v54 = vperm.slane %v1154_v14, %v2318_v3  ;;  %v1275_v14 = vrot.slane %v2259_v33, 1 }
 0x418   : > { %1342 = vmatpush.msra.mxu1 %v1301_v34  ;;  %v1233_v20 = vadd.f32 %v1232_v6, %v1231_v43  ;;  %v1254_v34 = vrot.slane %v2414_v59, 3 }
 0x419   : > { %v1201_v26 = vsel %vm691_vm0, %v1187_v16, 0.0  ;;  %v1243_v44 = vsel %vm691_vm0, %v1193_v35, 0.0  ;;  %v1252_v16 = vrot.slane %v2414_v59, 1 }
 0x41a   : > { %v1202_v24 = vrot.slane %v1201_v26, 4  ;;  %v1244_v52 = vrot.slane %v1243_v44, 4  ;;  %1343 = vmatpush.msra.mxu1 %v1300_v51 }
 0x41c   : > { %v1203_v30 = vadd.f32 %v1202_v24, %v1201_v26  ;;  %v1245_v0 = vadd.f32 %v1244_v52, %v1243_v44  ;;  %v1357_v24 = vperm.slane %v2387_v10, %v2318_v3  ;;  %v1255_v52 = vrot.slane %v2414_v59, 4 }
 0x41e   : > { %v1149_v41 = vpop.permute.xlu0 %1148  ;;  %v1204_v23 = vrot.slane %v1203_v30, 2  ;;  %v1246_v28 = vrot.slane %v1245_v0, 2 }
 0x41f   : > { %v1186_v42 = vmul.f32 %v1149_v41, %v2219_v19  ;;  %v1352_v50 = vperm.slane %v1149_v41, %v2318_v3  ;;  %v1299_v19 = vld [vmem:[#allocation8 + $0x8] sm:$0xff] }
 0x420   : > { %v1205_v53 = vadd.f32 %v1204_v23, %v1203_v30  ;;  %1344 = vmatpush.msra.mxu1 %v1299_v19  ;;  %v1247_v31 = vadd.f32 %v1246_v28, %v1245_v0  ;;  %v1234_v23 = vrot.slane %v1233_v20, 1 }
 0x421   : > { %v1194_v45 = vsel %vm691_vm0, %v1186_v42, 0.0  ;;  %v1360_v46 = vsel %vm1003_vm1, %v1353_v54, %v1352_v50  ;;  %v1359_v42 = vperm.slane %v2397_v25, %v2318_v3 }
 0x422   : > { %v1195_v49 = vrot.slane %v1194_v45, 4  ;;  %v1206_v1 = vrot.slane %v1205_v53, 1  ;;  %v1361_v9 = vsel %vm1005_vm2, %v1354_v62, %v1360_v46  ;;  %1345 = vmatpush.msra.mxu1 %v1298_v61  ;;  %v1235_v19 = vadd.f32 %v1234_v23, %v1233_v20 }
 0x423   : > { %v1362_v18 = vsel %vm1007_vm3, %v1355_v7, %v1361_v9  ;;  %v1277_v61 = vrot.slane %v2259_v33, 3  ;;  %v1258_v7 = vrot.slane %v2414_v59, 7 }
 0x424   : > { %v1196_v55 = vadd.f32 %v1195_v49, %v1194_v45  ;;  %v1207_v4 = vadd.f32 %v1206_v1, %v1205_v53 }
 0x426   : > { %v1197_v57 = vrot.slane %v1196_v55, 2  ;;  %v1169_v60 = vpop.permute.xlu0 %1168  ;;  %v1268_v38 = vadd.f32 %v1252_v16, %v1207_v4 }
 0x427   : > { %v1190_v5 = vmul.f32 %v1169_v60, %v2274_v36  ;;  %v1356_v13 = vperm.slane %v1169_v60, %v2318_v3  ;;  %v1220_v36 = vrot.slane %v1219_v39, 1 }
 0x428   : > { %v1198_v8 = vadd.f32 %v1197_v57, %v1196_v55  ;;  %v1291_v25 = vadd.f32 %v1275_v14, %v1268_v38  ;;  %v1278_v57 = vrot.slane %v2259_v33, 4  ;;  %v1281_v14 = vrot.slane %v2259_v33, 7 }
 0x429   : > { %v1222_v12 = vsel %vm691_vm0, %v1190_v5, 0.0  ;;  %v1363_v26 = vsel %vm1009_vm4, %v1356_v13, %v1362_v18  ;;  %v1221_v21 = vadd.f32 %v1220_v36, %v1219_v39  ;;  %v1292_v39 = vadd.f32 %v1276_v27, %v1269_v48 }
 0x42a   : > { %v1199_v17 = vrot.slane %v1198_v8, 1  ;;  %v1223_v2 = vrot.slane %v1222_v12, 4  ;;  %v1364_v44 = vsel %vm1011_vm5, %v1357_v24, %v1363_v26  ;;  %v1314_v0 = vrot.slane %v1291_v25, 7 }
 0x42b   : > { %v1270_v55 = vadd.f32 %v1254_v34, %v1221_v21  ;;  %v1280_v18 = vrot.slane %v2259_v33, 6 }
 0x42c   : > { %v1224_v11 = vadd.f32 %v1223_v2, %v1222_v12  ;;  %v1200_v15 = vadd.f32 %v1199_v17, %v1198_v8  ;;  %v1316_v12 = vrot.slane %v1292_v39, 6  ;;  %v1257_v2 = vrot.slane %v2414_v59, 6 }
 0x42d   : > { %v1293_v6 = vadd.f32 %v1277_v61, %v1270_v55 }
 0x42e   : > { %v1225_v35 = vrot.slane %v1224_v11, 2  ;;  %v1179_v30 = vpop.permute.xlu0 %1178  ;;  %v1267_v45 = vadd.f32 %v2414_v59, %v1200_v15 }
 0x42f   : > { %v1192_v40 = vmul.f32 %v1179_v30, %v2255_v32  ;;  %v1358_v41 = vperm.slane %v1179_v30, %v2318_v3  ;;  %v1248_v3 = vrot.slane %v1247_v31, 1  ;;  %v1318_v4 = vrot.slane %v1293_v6, 5 }
 0x430   : > { %v1226_v37 = vadd.f32 %v1225_v35, %v1224_v11  ;;  %v1290_v56 = vadd.f32 %v2259_v33, %v1267_v45 }
 0x431   : > { %v1236_v47 = vsel %vm691_vm0, %v1192_v40, 0.0  ;;  %v1365_v10 = vsel %vm1013_vm6, %v1358_v41, %v1364_v44  ;;  %v1249_v62 = vadd.f32 %v1248_v3, %v1247_v31 }
 0x432   : > { %v1227_v32 = vrot.slane %v1226_v37, 1  ;;  %v1237_v49 = vrot.slane %v1236_v47, 4  ;;  %v1366_v50 = vsel %vm1015_vm7, %v1359_v42, %v1365_v10  ;;  %v1315_v9 = vsel %vm1003_vm1, %v1314_v0, %v1290_v56 }
 0x433   : > { %v1368_v51 = vsel %vm1018_vm8, %v1366_v50, %v2380_v58  ;;  %v1256_v58 = vrot.slane %v2414_v59, 5  ;;  %v1274_v36 = vadd.f32 %v1258_v7, %v1249_v62  ;;  %v1317_v28 = vsel %vm1005_vm2, %v1316_v12, %v1315_v9 }
 0x434   : > { %v1228_v53 = vadd.f32 %v1227_v32, %v1226_v37  ;;  %v1238_v43 = vadd.f32 %v1237_v49, %v1236_v47  ;;  %v1370_v54 = vsel %vm1369_vm9, %v1368_v51, 0.0  ;;  %v1319_v16 = vsel %vm1007_vm3, %v1318_v4, %v1317_v28 }
 0x435   : > { %1371 = vst [vmem:[%s675_s29] sm:$0xff] %v1370_v54  ;;  %v1272_v8 = vadd.f32 %v1256_v58, %v1235_v19  ;;  %v1297_v22 = vadd.f32 %v1281_v14, %v1274_v36 }
 0x436   : > { %v1271_v46 = vadd.f32 %v1255_v52, %v1228_v53  ;;  %v1239_v60 = vrot.slane %v1238_v43, 2 }
 0x437   : > { %v1295_v20 = vadd.f32 %v1279_v63, %v1272_v8  ;;  %v1326_v24 = vrot.slane %v1297_v22, 1 }
 0x438   : > { %v1294_v1 = vadd.f32 %v1278_v57, %v1271_v46  ;;  %v1240_v5 = vadd.f32 %v1239_v60, %v1238_v43 }
 0x439   : > { %v1322_v59 = vrot.slane %v1295_v20, 3 }
 0x43a   : > { %v1241_v13 = vrot.slane %v1240_v5, 1  ;;  %v1320_v17 = vrot.slane %v1294_v1, 4 }
 0x43c   : > { %v1242_v27 = vadd.f32 %v1241_v13, %v1240_v5  ;;  %v1321_v26 = vsel %vm1009_vm4, %v1320_v17, %v1319_v16 }
 0x43d   : > { %v1323_v21 = vsel %vm1011_vm5, %v1322_v59, %v1321_v26 }
 0x43e   : > { %v1273_v11 = vadd.f32 %v1257_v2, %v1242_v27 }
 0x440   : > { %v1296_v15 = vadd.f32 %v1280_v18, %v1273_v11 }
 0x442   : > { %v1324_v29 = vrot.slane %v1296_v15, 2 }
 0x444   : > { %v1325_v35 = vsel %vm1013_vm6, %v1324_v29, %v1323_v21 }
 0x445   : > { %v1327_v30 = vsel %vm1015_vm7, %v1326_v24, %v1325_v35 }
 0x446   : > { %1582 = vmatmul.msk.f32.vlgmr.msra.gmra.mxu1 %vm691_vm0, %v1327_v30 }
 0x447   : > { %1836 = shalt.err (!%p1833_p12)
}
 0x448   : > { %1606 = dma.vmem_to_hbm [thread:$0]  (%p2083_p0), %s1405_s19, 128, %s1407_s22, %s1378_s23  }
 0x449   : > { %s2582_s29 = sld [smem:[#allocation32_spill]]  ;;  %s668_s14 = scalar_lea.vmem [#allocation9], %s2137_s17 }
 0x44a   : > { %s2583_s10 = sld [smem:[#allocation33_spill]]  ;;  %s1390_s28 = sshll.u32 %s668_s14, 4  ;;  %s1391_s28 = int_to_ptr.vmem [resolvable:$true] %s1390_s28 }
 0x44b   : > { %s1373_s19 = scalar_lea.sflag [#allocation5], %s2134_s13 }
 0x44f   : > { %v1676_v33 = vld [vmem:[%s2582_s29] ss:$0 sm:$0xff] }
 0x450   : > { %s1388_s24 = scalar_lea.hbm %s2583_s10, %s2185_s26  ;;  %s1857_s26 = scalar_lea.hbm %s2583_s10, 16 }
 0x451   : > { %s1392_s16 = sshll.u32 %s1388_s24, 4  ;;  %s1393_s16 = int_to_ptr.hbm [resolvable:$true] %s1392_s16 }
 0x452   : > { %s1851_s22 = sshra.s32 %s1393_s16, 4  ;;  %s1852_s22 = int_to_ptr.hbm [resolvable:$true] %s1851_s22 }
 0x453   : > { %s1853_s23 = scalar_lea.hbm %s1852_s22, 8  ;;  %p1858_p4 = scmp.lt.s32.totalorder %s1852_s22, %s2583_s10 }
 0x454   : > { %p1854_p5 = scmp.ne.s32.totalorder %s1852_s22, %s1853_s23  ;;  %p1859_p1 = scmp.lt.s32.totalorder %s1857_s26, %s1853_s23 }
 0x456   : > { %p1855_p11 = pnand %p1854_p5, %p2083_p0  ;;  %p1860_p3 = por %p1859_p1, %p1858_p4 }
 0x458   : > { %p1856_p2 = pneg %p1855_p11 }
 0x45a   : > { %p1861_p13 = pnand %p1860_p3, %p1856_p2 }
 0x4c3   : > { %v1347_v31 = vpop.f32.mrf.mxu1 }
 0x4c4   : > { %v1348_v38 = vadd.f32 %v1676_v33, %v1347_v31 }
 0x4c6   : > { %1717 = vtanh.f32 %v1348_v38 }
 0x4cc   : > { %v1718_v40 = vpop.eup %1717 }
 0x4cd   : > { %1351 = vst.msk [vmem:[%s668_s14] sm:$0xff] %vm691_vm0, %v1718_v40 }
 0x4ce   : > { %1864 = shalt.err (!%p1861_p13)
}
 0x4cf   : > { %1605 = dma.vmem_to_hbm [thread:$0]  (%p2083_p0), %s1391_s28, 128, %s1393_s16, %s1373_s19  }
 0x4d0 PF: > { %s2584_s13 = sld [smem:[#allocation17_spill]] }
 0x4d1   : > { %s2586_s15 = sld [smem:[#allocation19_spill]] }
 0x4d6   : > { %s1418_s29 = sand.u32 1, %s2584_s13  }
 0x4d7   : > { %p2587_p7 = scmp.ge.s32.totalorder %s2586_s15, 2  ;;  %s1419_s0 = scalar_lea.sflag [#allocation5], %s1418_s29 }
 0x4d9   : > { %p1621_p9 = pnand %p2587_p7, %p2089_p6 }
 0x4db   : > { %p1622_p8 = pneg %p1621_p9 }
 0x4dd   : > { %1894 = dma.done.wait (%p1622_p8), %s1419_s0, 128  }
 0x4de   : > { %1896 = vsyncadd (%p1622_p8), %s1419_s0, 4294967168  ;;  %s1429_s12 = scalar_lea.sflag [#allocation11], %s1418_s29 }
 0x4df   : > { %1898 = dma.done.wait (%p1622_p8), %s1429_s12, 128  }
 0x4e0   : > { %1900 = vsyncadd (%p1622_p8), %s1429_s12, 4294967168  ;;  %s2588_s19 = sld [smem:[#allocation20_spill]]  ;;  %s2591_s29 = smov %s1907_s30 }
 0x4e1   : > { %s2589_s24 = sld [smem:[#allocation18_spill]] }
 0x4e2   : > { %s2590_s0 = sld [smem:[#allocation21_spill]] }
 0x4e6   : > { %p39_p0 = scmp.ge.s32.totalorder %s2588_s19, 4  }
 0x4e7   : > { %s2592_s30 = smov %s2589_s24 }
 0x4e8   :  { %41 = sbr.rel (!%p39_p0) target bundleno = 22 (0x16), region = 170 }
 0x4ed   :  { %1435 = vsyncpa [#allocation4], 1 }
 0x4ee   :  { %1437 = vsyncpa [#allocation4 + $0x1], 1 }
 0x4ef   :  { %1438 = vsyncpa [#allocation7], 1 }
 0x4f0   :  { %1440 = vsyncpa [#allocation7 + $0x1], 1 }
 0x4f1   :  { %1441 = vsyncpa [#allocation5], 1 }
 0x4f2   :  { %1443 = vsyncpa [#allocation5 + $0x1], 1 }
 0x4f3   :  { %1444 = vsyncpa [#allocation11], 1 }
 0x4f4   :  { %1446 = vsyncpa [#allocation11 + $0x1], 1 }

</bundles_post_ra>
